<compile_context>
chip_gen: v6e
topology: v6e:2x2x1
jax: 0.10.0
libtpu: 0.0.40
codegen_flags: <defaults>
</compile_context>

<pallas_src>
import jax
import jax.numpy as jnp
from jax import lax
from jax.experimental import pallas as pl
from jax.experimental.pallas import tpu as pltpu

_LANE = 128


def _round_up(v: int, m: int) -> int:
    return ((v + m - 1) // m) * m


def _label_predictor_kernel(x_ref, w_ref, b_ref, o_ref):
    # x_ref : (tb, C)  batch tile (batch on sublanes, concepts on lanes)
    # w_ref : (N,  C)  weight, VMEM-resident across all grid steps
    # b_ref : (N,  1)  bias column, VMEM-resident
    # o_ref : (N, tb)  transposed output tile (classes on sublanes, batch on lanes)
    acc = lax.dot_general(
        w_ref[...], x_ref[...],
        dimension_numbers=(((1,), (1,)), ((), ())),   # contract concept dim of both
        preferred_element_type=jnp.float32,
    )                                                  # (N, tb), f32 accumulate on MXU
    o_ref[...] = (acc + b_ref[...]).astype(o_ref.dtype)


def label_predictor(x, weight, bias, *, block_b: int = 8192,
                    min_pallas_batch: int = 1024, return_transposed: bool = False):
    """x: (B, concept_dim), weight: (num_classes, concept_dim), bias: (num_classes,).

    Returns class logits of shape (B, num_classes), or (num_classes, B) when
    return_transposed=True (lets HBM-bound consumers skip the layout flip).
    """
    B, C = x.shape
    N, C2 = weight.shape
    assert C == C2, "concept_dim mismatch"
    assert block_b % _LANE == 0

    # Small-B fast path: a single fused XLA dot beats any kernel launch.
    if B < min_pallas_batch:
        out = x @ weight.T + bias.astype(x.dtype)
        return out.T if return_transposed else out

    # Batch tile: multiple of 128 lanes, capped at block_b, and small enough
    # that the grid has >= 2 steps whenever possible (dual-TC sharding on v7x;
    # harmless on single-TC v5e/v6e).  No padding of x or the output — the
    # ragged last block is handled by Pallas with masked stores.
    tb = max(_LANE, min(block_b, _round_up(pl.cdiv(B, 2), _LANE)))
    nb = pl.cdiv(B, tb)

    out_t = pl.pallas_call(
        _label_predictor_kernel,
        out_shape=jax.ShapeDtypeStruct((N, B), x.dtype),
        grid=(nb,),
        in_specs=[
            pl.BlockSpec((tb, C), lambda i: (i, 0)),   # batch tile marches (C = full dim)
            pl.BlockSpec((N, C), lambda i: (0, 0)),    # weight resident in VMEM
            pl.BlockSpec((N, 1), lambda i: (0, 0)),    # bias resident in VMEM
        ],
        out_specs=pl.BlockSpec((N, tb), lambda i: (0, i)),  # lane-dense (batch on lanes)
        compiler_params=pltpu.CompilerParams(
            dimension_semantics=("parallel",),          # dual-TC sharding on v7x
            vmem_limit_bytes=32 * 1024 * 1024,          # plenty of headroom on v7x's 64 MiB
        ),
    )(x, weight, bias.reshape(N, 1).astype(jnp.float32))

    # Only flip to the PyTorch (B, N) convention if the caller asks for it.
    return out_t if return_transposed else out_t.T


def init_label_predictor_params(key, concept_dim=96, num_classes=8, std=0.02):
    # Mirrors nn.init.trunc_normal_(weight, std=0.02) and nn.init.zeros_(bias).
    w = std * jax.random.truncated_normal(
        key, -2.0, 2.0, (num_classes, concept_dim), dtype=jnp.float32)
    b = jnp.zeros((num_classes,), dtype=jnp.float32)
    return w, b


if __name__ == "__main__":
    concept_dim = 96
    num_classes = 8

    key = jax.random.PRNGKey(0)
    k_w, k_x1, k_x2 = jax.random.split(key, 3)

    weight, bias = init_label_predictor_params(k_w, concept_dim, num_classes)

    def ref(x):
        return x @ weight.T + bias

    # (a) Module-sized input (B=2): default path -> fused XLA dot (small-B fast path).
    x_small = jax.random.normal(k_x1, (2, concept_dim), dtype=jnp.float32)
    out_small = jax.block_until_ready(label_predictor(x_small, weight, bias))
    assert out_small.shape == (2, num_classes)
    assert jnp.allclose(out_small, ref(x_small), atol=1e-5, rtol=1e-5)

    # (b) Force the Pallas kernel on the same tiny input (single ragged block).
    out_small_k = jax.block_until_ready(
        label_predictor(x_small, weight, bias, min_pallas_batch=0))
    assert out_small_k.shape == (2, num_classes)
    assert jnp.allclose(out_small_k, ref(x_small), atol=1e-5, rtol=1e-5)

    # (c) Multi-step grid with a ragged last block and no wrapper-side padding.
    x_big = jax.random.normal(k_x2, (1031, concept_dim), dtype=jnp.float32)
    out_big = jax.block_until_ready(
        label_predictor(x_big, weight, bias, block_b=512, min_pallas_batch=0))
    assert out_big.shape == (1031, num_classes)
    assert jnp.allclose(out_big, ref(x_big), atol=1e-5, rtol=1e-5)

    # (d) Transposed (N, B) output layout — consumer skips the wrapper transpose.
    out_t = jax.block_until_ready(
        label_predictor(x_big, weight, bias, block_b=512, min_pallas_batch=0,
                        return_transposed=True))
    assert out_t.shape == (num_classes, 1031)
    assert jnp.allclose(out_t.T, ref(x_big), atol=1e-5, rtol=1e-5)

    print("KERNEL_OK")
</pallas_src>

<mosaic_0001>
module attributes {stable_mosaic.version = 11 : i64} {
  func.func @_label_predictor_kernel(%arg0: i32, %arg1: memref<128x96xf32, #tpu.memory_space<vmem>>, %arg2: memref<8x96xf32, #tpu.memory_space<vmem>>, %arg3: memref<8x1xf32, #tpu.memory_space<vmem>>, %arg4: memref<8x128xf32, #tpu.memory_space<vmem>>) attributes {dimension_semantics = [#tpu.dimension_semantics<parallel>], iteration_bounds = array<i64: 1>, scalar_prefetch = 0 : i64, scratch_operands = 0 : i64, tpu.core_type = #tpu.core_type<tc>, window_params = [{transform_indices = @transform_0, window_bounds = array<i64: 128, 96>}, {pipeline_mode = #tpu.pipeline_mode<synchronous>, transform_indices = @transform_1, window_bounds = array<i64: 8, 96>}, {pipeline_mode = #tpu.pipeline_mode<synchronous>, transform_indices = @transform_2, window_bounds = array<i64: 8, 1>}, {transform_indices = @transform_3, window_bounds = array<i64: 8, 128>}]} {
    %c0 = arith.constant 0 : index
    %c0_0 = arith.constant 0 : index
    %0 = vector.load %arg2[%c0, %c0_0] : memref<8x96xf32, #tpu.memory_space<vmem>>, vector<8x96xf32>
    %c0_1 = arith.constant 0 : index
    %c0_2 = arith.constant 0 : index
    %1 = vector.load %arg1[%c0_1, %c0_2] : memref<128x96xf32, #tpu.memory_space<vmem>>, vector<128x96xf32>
    %cst = arith.constant dense<0.000000e+00> : vector<8x128xf32>
    %2 = tpu.matmul %0, %1, %cst {dimension_numbers = #tpu.dot_dimension_numbers<[1], [1], [0], [0], [0, 0, 1, 0], [], []>} : vector<8x96xf32>, vector<128x96xf32>, vector<8x128xf32> -> vector<8x128xf32>
    %c0_3 = arith.constant 0 : index
    %c0_4 = arith.constant 0 : index
    %3 = vector.load %arg3[%c0_3, %c0_4] : memref<8x1xf32, #tpu.memory_space<vmem>>, vector<8x1xf32>
    %4 = vector.broadcast %3 : vector<8x1xf32> to vector<8x128xf32>
    %5 = arith.addf %2, %4 : vector<8x128xf32>
    %c0_5 = arith.constant 0 : index
    %c0_6 = arith.constant 0 : index
    %6 = vector.load %arg4[%c0_5, %c0_6] : memref<8x128xf32, #tpu.memory_space<vmem>>, vector<8x128xf32>
    tpu.vector_store %arg4[%c0_5, %c0_6], %5 {strides = array<i32>} : memref<8x128xf32, #tpu.memory_space<vmem>>, vector<8x128xf32>,
    return
  }
  func.func @transform_0(%arg0: i32) -> (i32, i32) {
    %c0_i32 = arith.constant 0 : i32
    %c0_i32_0 = arith.constant 0 : i32
    return %arg0, %c0_i32 : i32, i32
  }
  func.func @transform_1(%arg0: i32) -> (i32, i32) {
    %c0_i32 = arith.constant 0 : i32
    %c0_i32_0 = arith.constant 0 : i32
    %c0_i32_1 = arith.constant 0 : i32
    return %c0_i32, %c0_i32_0 : i32, i32
  }
  func.func @transform_2(%arg0: i32) -> (i32, i32) {
    %c0_i32 = arith.constant 0 : i32
    %c0_i32_0 = arith.constant 0 : i32
    %c0_i32_1 = arith.constant 0 : i32
    return %c0_i32, %c0_i32_0 : i32, i32
  }
  func.func @transform_3(%arg0: i32) -> (i32, i32) {
    %c0_i32 = arith.constant 0 : i32
    %c0_i32_0 = arith.constant 0 : i32
    return %c0_i32, %arg0 : i32, i32
  }
}

</mosaic_0001>

<bundles_post_ra>
// kernel: tpu_custom_call.1
= control target key start
LH: loop header
LB: loop body
LE: loop exit
PB: predicated region body
PF: predicated region fallthrough
CT: control target
= control target key end

     0   :  { %vm37_vm0 = vcmask 785408   ;;  %v237_v0 = vmov 0.0   ;;  %vm238_vm1 = vmmov 0   ;;  %v239_v2 = vmov 0   ;;  %s334_s0 = inlined_call_operand.vmem [shape: f32[2,96], index: 0, kind: input, shape index: {}]   ;;  %s335_s2 = inlined_call_operand.vmem [shape: f32[8,1], index: 2, kind: input, shape index: {}]   ;;  %s336_s1 = inlined_call_operand.vmem [shape: f32[8,96], index: 1, kind: input, shape index: {}]   ;;  %s337_s3 = inlined_call_operand.vmem [shape: f32[8,2], index: 3, kind: output, shape index: {}]  }
   0x1   :  { %198 = vmatprep.subr.mxu0 %v237_v0  ;;  %v30_v1 = vld [vmem:[%s334_s0 + $0x78] sm:$0xff]  ;;  %230 = vmatprep.mubr.msk.f32.mxu0 %vm238_vm1, %v237_v0  ;;  %v29_v3 = vld [vmem:[%s334_s0 + $0x70] sm:$0xff]  ;;  %v31_v4 = vld [vmem:[%s335_s2] sm:$0xff] }
   0x2   :  { %199 = vmatpush3.xpose.msk.msra.mxu0 %vm37_vm0, %v30_v1  ;;  %236 = vset.pattern.permute.xlu0 %v239_v2  ;;  %v28_v5 = vld [vmem:[%s334_s0 + $0x68] sm:$0xff]  ;;  %v27_v6 = vld [vmem:[%s334_s0 + $0x60] sm:$0xff]  ;;  %v26_v7 = vld [vmem:[%s334_s0 + $0x58] sm:$0xff] }
   0x3   :  { %200 = vmatprep.subr.mxu0 %v237_v0  ;;  %34 = vperm.xlu0 %236, %v31_v4   ;;  %v25_v8 = vld [vmem:[%s334_s0 + $0x50] sm:$0xff]  ;;  %v24_v9 = vld [vmem:[%s334_s0 + $0x48] sm:$0xff]  ;;  %v23_v10 = vld [vmem:[%s334_s0 + $0x40] sm:$0xff] }
   0x4   :  { %v22_v11 = vld [vmem:[%s334_s0 + $0x38] sm:$0xff]  ;;  %v21_v12 = vld [vmem:[%s334_s0 + $0x30] sm:$0xff]  ;;  %v20_v13 = vld [vmem:[%s334_s0 + $0x28] sm:$0xff] }
   0x5   :  { %v19_v14 = vld [vmem:[%s334_s0 + $0x20] sm:$0xff]  ;;  %v18_v15 = vld [vmem:[%s334_s0 + $0x18] sm:$0xff]  ;;  %v17_v16 = vld [vmem:[%s334_s0 + $0x10] sm:$0xff] }
   0x6   :  { %201 = vmatpush3.xpose.msk.msra.mxu0 %vm37_vm0, %v29_v3  ;;  %v16_v17 = vld [vmem:[%s334_s0 + $0x8] sm:$0xff]  ;;  %v15_v18 = vld [vmem:[%s334_s0] sm:$0xff] }
   0x7   :  { %202 = vmatprep.subr.mxu0 %v237_v0  ;;  %v14_v19 = vld [vmem:[%s336_s1] sm:$0xff] }
   0xa   :  { %203 = vmatpush3.xpose.msk.msra.mxu0 %vm37_vm0, %v28_v5 }
   0xb   :  { %204 = vmatprep.subr.mxu0 %v237_v0 }
   0xe   :  { %205 = vmatpush3.xpose.msk.msra.mxu0 %vm37_vm0, %v27_v6 }
   0xf   :  { %206 = vmatprep.subr.mxu0 %v237_v0 }
  0x12   :  { %207 = vmatpush3.xpose.msk.msra.mxu0 %vm37_vm0, %v26_v7 }
  0x13   :  { %208 = vmatprep.subr.mxu0 %v237_v0 }
  0x16   :  { %209 = vmatpush3.xpose.msk.msra.mxu0 %vm37_vm0, %v25_v8 }
  0x17   :  { %210 = vmatprep.subr.mxu0 %v237_v0 }
  0x1a   :  { %211 = vmatpush3.xpose.msk.msra.mxu0 %vm37_vm0, %v24_v9 }
  0x1b   :  { %212 = vmatprep.subr.mxu0 %v237_v0 }
  0x1e   :  { %213 = vmatpush3.xpose.msk.msra.mxu0 %vm37_vm0, %v23_v10 }
  0x1f   :  { %214 = vmatprep.subr.mxu0 %v237_v0 }
  0x22   :  { %215 = vmatpush3.xpose.msk.msra.mxu0 %vm37_vm0, %v22_v11 }
  0x23   :  { %216 = vmatprep.subr.mxu0 %v237_v0 }
  0x26   :  { %217 = vmatpush3.xpose.msk.msra.mxu0 %vm37_vm0, %v21_v12 }
  0x27   :  { %218 = vmatprep.subr.mxu0 %v237_v0 }
  0x2a   :  { %219 = vmatpush3.xpose.msk.msra.mxu0 %vm37_vm0, %v20_v13 }
  0x2b   :  { %220 = vmatprep.subr.mxu0 %v237_v0 }
  0x2e   :  { %221 = vmatpush3.xpose.msk.msra.mxu0 %vm37_vm0, %v19_v14 }
  0x2f   :  { %222 = vmatprep.subr.mxu0 %v237_v0 }
  0x32   :  { %223 = vmatpush3.xpose.msk.msra.mxu0 %vm37_vm0, %v18_v15 }
  0x33   :  { %224 = vmatprep.subr.mxu0 %v237_v0 }
  0x36   :  { %225 = vmatpush3.xpose.msk.msra.mxu0 %vm37_vm0, %v17_v16 }
  0x37   :  { %226 = vmatprep.subr.mxu0 %v237_v0 }
  0x3a   :  { %227 = vmatpush3.xpose.msk.msra.mxu0 %vm37_vm0, %v16_v17 }
  0x3b   :  { %228 = vmatprep.subr.mxu0 %v237_v0 }
  0x3e   :  { %229 = vmatpush3.xpose.msk.msra.mxu0 %vm37_vm0, %v15_v18 }
  0x41   :  { %231 = vmatmul.mubr.msk.f32.vlgmr.msra.gmra.mxu0 %vm37_vm0, %v14_v19 }
  0x7e   :  { %v35_v20 = vpop.permute.xlu0 %34 }
 0x101   :  { %v155_v21 = vpop.f32.mrf.mxu0 }
 0x102   :  { %v156_v22 = vadd.f32 %v155_v21, %v35_v20 }
 0x103   :  { %v232_v23 = vpop.f32.mrf.mxu0 }
 0x104   :  { %159 = vst [vmem:[%s337_s3] sm:$0xff] %v156_v22 }

</bundles_post_ra>
